<compile_context>
chip_gen: v6e
topology: v6e:2x2x1
jax: 0.10.0
libtpu: 0.0.40
codegen_flags: <defaults>
</compile_context>

<pallas_src>
import functools

import jax
import jax.numpy as jnp
from jax import lax
from jax.experimental import pallas as pl
from jax.experimental.pallas import tpu as pltpu


def _lstm_kernel(x_ref, wih_ref, whh_ref, out_ref, xg_scr, h_scr, c_scr,
                 *, chunk, batch_pad, hidden_pad):
    Bp = batch_pad
    Hp = hidden_pad
    f32 = jnp.float32

    # Zero the carried recurrent state on the first time-chunk only.
    @pl.when(pl.program_id(0) == 0)
    def _():
        h_scr[...] = jnp.zeros_like(h_scr)
        c_scr[...] = jnp.zeros_like(c_scr)

    # ---- Phase 1: hoisted input projection for every timestep of this chunk.
    # (chunk*Bp, I) bf16 @ (I, 4*Hp) bf16 -> f32 accumulation on the MXU.
    xg_scr[...] = jnp.dot(x_ref[...], wih_ref[...],
                          preferred_element_type=f32)

    whh = whh_ref[...]                                  # (Hp, 4*Hp) bf16, loaded once

    # Hoisted activation masks. Packed gate order is [i, f, o, g];
    # sigmoid(x) = 0.5*tanh(0.5*x) + 0.5, so one tanh over the full
    # (Bp, 4*Hp) slab covers all four gates.
    lane = lax.broadcasted_iota(jnp.int32, (Bp, 4 * Hp), 1)
    sig_lane = lane < 3 * Hp
    scale = jnp.where(sig_lane, jnp.float32(0.5), jnp.float32(1.0))
    shift = jnp.where(sig_lane, jnp.float32(0.5), jnp.float32(0.0))

    # ---- Phase 2: sequential recurrence over the timesteps of this chunk.
    def step(t, carry):
        h_prev, c_prev = carry                          # (Bp, Hp) f32 each
        r0 = pl.multiple_of(t * Bp, Bp)                 # sublane-aligned row offset
        x_gate = xg_scr[pl.ds(r0, Bp), :]               # (Bp, 4*Hp) f32
        gates = x_gate + jnp.dot(h_prev.astype(whh.dtype), whh,
                                 preferred_element_type=f32)
        act = jnp.tanh(gates * scale) * scale + shift   # single EUP pass over all gates
        i_g = act[:, 0 * Hp:1 * Hp]
        f_g = act[:, 1 * Hp:2 * Hp]
        o_g = act[:, 2 * Hp:3 * Hp]
        g_g = act[:, 3 * Hp:4 * Hp]
        c_new = f_g * c_prev + i_g * g_g
        h_new = o_g * jnp.tanh(c_new)
        out_ref[pl.ds(r0, Bp), :] = h_new.astype(out_ref.dtype)
        return (h_new, c_new)

    h_fin, c_fin = lax.fori_loop(0, chunk, step, (h_scr[...], c_scr[...]),
                                 unroll=min(chunk, 8))
    h_scr[...] = h_fin
    c_scr[...] = c_fin


def batch_rnn_forward(x, w_ih, w_hh, *, time_chunk=128):
    """BatchRNN forward (default config).

    x    : (T, B, I) float32
    w_ih : (4H, I)   float32  (PyTorch weight_ih_l0 layout, gate order [i,f,g,o])
    w_hh : (4H, H)   float32  (PyTorch weight_hh_l0 layout)
    returns (T, B, H) float32
    """
    T, B, I = x.shape
    H4, H = w_hh.shape
    assert H4 == 4 * H and w_ih.shape == (4 * H, I)

    f32 = jnp.float32
    bf16 = jnp.bfloat16

    # Lane-dense hidden dim, sublane-aligned batch, chunked (and padded) time.
    Hp = ((H + 127) // 128) * 128
    Bp = ((B + 7) // 8) * 8
    chunk = max(1, min(time_chunk, T))
    Tpad = ((T + chunk - 1) // chunk) * chunk
    n_chunks = Tpad // chunk

    # Per-gate transpose + zero-pad into lane-dense layouts, with gate blocks
    # reordered from PyTorch [i, f, g, o] to packed [i, f, o, g] so the three
    # sigmoid gates are contiguous lanes:
    #   wih_p : (I, 4*Hp)   columns [g*Hp : g*Hp+H] = W_ih[gate, :, :].T
    #   whh_p : (Hp, 4*Hp)  block [:H, g*Hp:g*Hp+H] = W_hh[gate, :, :].T
    order = jnp.array([0, 1, 3, 2])
    wih_g = jnp.transpose(jnp.asarray(w_ih, f32).reshape(4, H, I)[order], (0, 2, 1))
    whh_g = jnp.transpose(jnp.asarray(w_hh, f32).reshape(4, H, H)[order], (0, 2, 1))
    wih_p = jnp.zeros((4, I, Hp), f32).at[:, :, :H].set(wih_g)
    wih_p = jnp.transpose(wih_p, (1, 0, 2)).reshape(I, 4 * Hp).astype(bf16)
    whh_p = jnp.zeros((4, Hp, Hp), f32).at[:, :H, :H].set(whh_g)
    whh_p = jnp.transpose(whh_p, (1, 0, 2)).reshape(Hp, 4 * Hp).astype(bf16)

    # Pad batch/time and flatten time into rows: (Tpad*Bp, I), bf16 MXU operand.
    x_p = jnp.zeros((Tpad, Bp, I), f32).at[:T, :B, :].set(x.astype(f32))
    x2 = x_p.reshape(Tpad * Bp, I).astype(bf16)

    kernel = functools.partial(_lstm_kernel, chunk=chunk,
                               batch_pad=Bp, hidden_pad=Hp)

    out2 = pl.pallas_call(
        kernel,
        out_shape=jax.ShapeDtypeStruct((Tpad * Bp, Hp), f32),
        grid_spec=pltpu.PrefetchScalarGridSpec(
            num_scalar_prefetch=0,
            grid=(n_chunks,),   # time-chunked; h/c carried in scratch across steps
            in_specs=[
                pl.BlockSpec((chunk * Bp, I), lambda i: (i, 0)),
                pl.BlockSpec((I, 4 * Hp), lambda i: (0, 0)),
                pl.BlockSpec((Hp, 4 * Hp), lambda i: (0, 0)),
            ],
            out_specs=pl.BlockSpec((chunk * Bp, Hp), lambda i: (i, 0)),
            scratch_shapes=[
                pltpu.VMEM((chunk * Bp, 4 * Hp), f32),   # hoisted x-projection
                pltpu.VMEM((Bp, Hp), f32),               # h (carried across chunks)
                pltpu.VMEM((Bp, Hp), f32),               # c (carried across chunks)
            ],
        ),
        compiler_params=pltpu.CompilerParams(
            dimension_semantics=("arbitrary",),          # serial recurrence over time
            vmem_limit_bytes=64 * 1024 * 1024,
        ),
    )(x2, wih_p, whh_p)

    # Strip time / batch / hidden padding.
    return out2.reshape(Tpad, Bp, Hp)[:T, :B, :H]


def _reference_lstm(x, w_ih, w_hh):
    """Pure-JAX f32 reference (matches torch.nn.LSTM, bias=False, h0=c0=0)."""
    T, B, I = x.shape
    H = w_hh.shape[1]

    def step(carry, x_t):
        h, c = carry
        gates = x_t @ w_ih.T + h @ w_hh.T
        i_g = jax.nn.sigmoid(gates[:, 0 * H:1 * H])
        f_g = jax.nn.sigmoid(gates[:, 1 * H:2 * H])
        g_g = jnp.tanh(gates[:, 2 * H:3 * H])
        o_g = jax.nn.sigmoid(gates[:, 3 * H:4 * H])
        c = f_g * c + i_g * g_g
        h = o_g * jnp.tanh(c)
        return (h, c), h

    h0 = jnp.zeros((B, H), jnp.float32)
    c0 = jnp.zeros((B, H), jnp.float32)
    _, hs = jax.lax.scan(step, (h0, c0), x)
    return hs


if __name__ == "__main__":
    # Small shapes consistent with the module: seq=8, batch=2, input=16, hidden=32.
    T, B, I, H = 8, 2, 16, 32

    key = jax.random.PRNGKey(0)
    kx, kih, khh = jax.random.split(key, 3)

    # PyTorch LSTM init: U(-1/sqrt(H), 1/sqrt(H))
    bound = 1.0 / jnp.sqrt(jnp.float32(H))
    x = jax.random.normal(kx, (T, B, I), jnp.float32)
    w_ih = jax.random.uniform(kih, (4 * H, I), jnp.float32, -bound, bound)
    w_hh = jax.random.uniform(khh, (4 * H, H), jnp.float32, -bound, bound)

    # time_chunk=4 -> grid=(2,) so the h/c carry across grid steps is exercised.
    out = batch_rnn_forward(x, w_ih, w_hh, time_chunk=4)
    out = jax.block_until_ready(out)

    ref = _reference_lstm(x, w_ih, w_hh)
    assert out.shape == (T, B, H)
    # bf16 MXU operands (f32 accumulation) -> loosened tolerance vs pure-f32 ref.
    assert jnp.allclose(out, ref, atol=3e-2, rtol=3e-2), \
        float(jnp.max(jnp.abs(out - ref)))

    print("KERNEL_OK")
</pallas_src>

<mosaic_0001>
module attributes {stable_mosaic.version = 11 : i64} {
  func.func @_lstm_kernel(%arg0: i32, %arg1: memref<32x16xbf16, #tpu.memory_space<vmem>>, %arg2: memref<16x512xbf16, #tpu.memory_space<vmem>>, %arg3: memref<128x512xbf16, #tpu.memory_space<vmem>>, %arg4: memref<32x128xf32, #tpu.memory_space<vmem>>, %arg5: memref<32x512xf32, #tpu.memory_space<vmem>>, %arg6: memref<8x128xf32, #tpu.memory_space<vmem>>, %arg7: memref<8x128xf32, #tpu.memory_space<vmem>>) attributes {dimension_semantics = [#tpu.dimension_semantics<arbitrary>], iteration_bounds = array<i64: 2>, scalar_prefetch = 0 : i64, scratch_operands = 3 : i64, tpu.core_type = #tpu.core_type<tc>, window_params = [{transform_indices = @transform_0, window_bounds = array<i64: 32, 16>}, {pipeline_mode = #tpu.pipeline_mode<synchronous>, transform_indices = @transform_1, window_bounds = array<i64: 16, 512>}, {pipeline_mode = #tpu.pipeline_mode<synchronous>, transform_indices = @transform_2, window_bounds = array<i64: 128, 512>}, {transform_indices = @transform_3, window_bounds = array<i64: 32, 128>}]} {
    %c0_i32 = arith.constant 0 : i32
    %0 = arith.cmpi eq, %arg0, %c0_i32 : i32
    %1 = arith.extui %0 : i1 to i32
    %c0_i32_0 = arith.constant 0 : i32
    %2 = arith.cmpi ne, %1, %c0_i32_0 : i32
    scf.if %2 {
      %cst_36 = arith.constant 0.000000e+00 : f32
      %109 = vector.broadcast %cst_36 : f32 to vector<8x128xf32>
      %c0_37 = arith.constant 0 : index
      %c0_38 = arith.constant 0 : index
      %110 = vector.load %arg6[%c0_37, %c0_38] : memref<8x128xf32, #tpu.memory_space<vmem>>, vector<8x128xf32>
      tpu.vector_store %arg6[%c0_37, %c0_38], %109 {strides = array<i32>} : memref<8x128xf32, #tpu.memory_space<vmem>>, vector<8x128xf32>,
      %cst_39 = arith.constant 0.000000e+00 : f32
      %111 = vector.broadcast %cst_39 : f32 to vector<8x128xf32>
      %c0_40 = arith.constant 0 : index
      %c0_41 = arith.constant 0 : index
      %112 = vector.load %arg7[%c0_40, %c0_41] : memref<8x128xf32, #tpu.memory_space<vmem>>, vector<8x128xf32>
      tpu.vector_store %arg7[%c0_40, %c0_41], %111 {strides = array<i32>} : memref<8x128xf32, #tpu.memory_space<vmem>>, vector<8x128xf32>,
    } else {
    }
    %c0 = arith.constant 0 : index
    %c0_1 = arith.constant 0 : index
    %3 = vector.load %arg1[%c0, %c0_1] : memref<32x16xbf16, #tpu.memory_space<vmem>>, vector<32x16xbf16>
    %c0_2 = arith.constant 0 : index
    %c0_3 = arith.constant 0 : index
    %4 = vector.load %arg2[%c0_2, %c0_3] : memref<16x512xbf16, #tpu.memory_space<vmem>>, vector<16x512xbf16>
    %cst = arith.constant dense<0.000000e+00> : vector<32x512xf32>
    %5 = tpu.matmul %3, %4, %cst {dimension_numbers = #tpu.dot_dimension_numbers<[1], [0], [0], [1], [0, 0, 1, 1], [], []>} : vector<32x16xbf16>, vector<16x512xbf16>, vector<32x512xf32> -> vector<32x512xf32>
    %c0_4 = arith.constant 0 : index
    %c0_5 = arith.constant 0 : index
    %6 = vector.load %arg5[%c0_4, %c0_5] : memref<32x512xf32, #tpu.memory_space<vmem>>, vector<32x512xf32>
    tpu.vector_store %arg5[%c0_4, %c0_5], %5 {strides = array<i32>} : memref<32x512xf32, #tpu.memory_space<vmem>>, vector<32x512xf32>,
    %c0_6 = arith.constant 0 : index
    %c0_7 = arith.constant 0 : index
    %7 = vector.load %arg3[%c0_6, %c0_7] : memref<128x512xbf16, #tpu.memory_space<vmem>>, vector<128x512xbf16>
    %8 = tpu.iota {dimensions = array<i32: 1>} : vector<8x512xi32>
    %c384_i32 = arith.constant 384 : i32
    %9 = vector.broadcast %c384_i32 : i32 to vector<8x512xi32>
    %10 = arith.cmpi slt, %8, %9 : vector<8x512xi32>
    %cst_8 = arith.constant 5.000000e-01 : f32
    %cst_9 = arith.constant 1.000000e+00 : f32
    %11 = vector.broadcast %cst_8 : f32 to vector<8x512xf32>
    %12 = vector.broadcast %cst_9 : f32 to vector<8x512xf32>
    %13 = arith.select %10, %11, %12 : vector<8x512xi1>, vector<8x512xf32>
    %cst_10 = arith.constant 5.000000e-01 : f32
    %cst_11 = arith.constant 0.000000e+00 : f32
    %14 = vector.broadcast %cst_10 : f32 to vector<8x512xf32>
    %15 = vector.broadcast %cst_11 : f32 to vector<8x512xf32>
    %16 = arith.select %10, %14, %15 : vector<8x512xi1>, vector<8x512xf32>
    %c0_12 = arith.constant 0 : index
    %c0_13 = arith.constant 0 : index
    %17 = vector.load %arg6[%c0_12, %c0_13] : memref<8x128xf32, #tpu.memory_space<vmem>>, vector<8x128xf32>
    %c0_14 = arith.constant 0 : index
    %c0_15 = arith.constant 0 : index
    %18 = vector.load %arg7[%c0_14, %c0_15] : memref<8x128xf32, #tpu.memory_space<vmem>>, vector<8x128xf32>
    %c0_i32_16 = arith.constant 0 : i32
    %c8_i32 = arith.constant 8 : i32
    %19 = arith.muli %c0_i32_16, %c8_i32 : i32
    %20 = tpu.assume_multiple %19, 8 : i32
    %21 = arith.index_cast %20 : i32 to index
    %c0_17 = arith.constant 0 : index
    %22 = vector.load %arg5[%21, %c0_17] : memref<32x512xf32, #tpu.memory_space<vmem>>, vector<8x512xf32>
    %23 = arith.truncf %17 : vector<8x128xf32> to vector<8x128xbf16>
    %cst_18 = arith.constant dense<0.000000e+00> : vector<8x512xf32>
    %24 = tpu.matmul %23, %7, %cst_18 {dimension_numbers = #tpu.dot_dimension_numbers<[1], [0], [0], [1], [0, 0, 1, 1], [], []>} : vector<8x128xbf16>, vector<128x512xbf16>, vector<8x512xf32> -> vector<8x512xf32>
    %25 = arith.addf %22, %24 : vector<8x512xf32>
    %26 = arith.mulf %25, %13 : vector<8x512xf32>
    %27 = math.tanh %26 : vector<8x512xf32>
    %28 = arith.mulf %27, %13 : vector<8x512xf32>
    %29 = arith.addf %28, %16 : vector<8x512xf32>
    %30 = vector.extract_strided_slice %29 {offsets = [0, 0], sizes = [8, 128], strides = [1, 1]} : vector<8x512xf32> to vector<8x128xf32>
    %31 = vector.extract_strided_slice %29 {offsets = [0, 128], sizes = [8, 128], strides = [1, 1]} : vector<8x512xf32> to vector<8x128xf32>
    %32 = vector.extract_strided_slice %29 {offsets = [0, 256], sizes = [8, 128], strides = [1, 1]} : vector<8x512xf32> to vector<8x128xf32>
    %33 = vector.extract_strided_slice %29 {offsets = [0, 384], sizes = [8, 128], strides = [1, 1]} : vector<8x512xf32> to vector<8x128xf32>
    %34 = arith.mulf %31, %18 : vector<8x128xf32>
    %35 = arith.mulf %30, %33 : vector<8x128xf32>
    %36 = arith.addf %34, %35 : vector<8x128xf32>
    %37 = math.tanh %36 : vector<8x128xf32>
    %38 = arith.mulf %32, %37 : vector<8x128xf32>
    %39 = arith.index_cast %20 : i32 to index
    %c0_19 = arith.constant 0 : index
    %40 = vector.load %arg4[%39, %c0_19] : memref<32x128xf32, #tpu.memory_space<vmem>>, vector<8x128xf32>
    tpu.vector_store %arg4[%39, %c0_19], %38 {strides = array<i32>} : memref<32x128xf32, #tpu.memory_space<vmem>>, vector<8x128xf32>,
    %c1_i32 = arith.constant 1 : i32
    %c8_i32_20 = arith.constant 8 : i32
    %41 = arith.muli %c1_i32, %c8_i32_20 : i32
    %42 = tpu.assume_multiple %41, 8 : i32
    %43 = arith.index_cast %42 : i32 to index
    %c0_21 = arith.constant 0 : index
    %44 = vector.load %arg5[%43, %c0_21] : memref<32x512xf32, #tpu.memory_space<vmem>>, vector<8x512xf32>
    %45 = arith.truncf %38 : vector<8x128xf32> to vector<8x128xbf16>
    %cst_22 = arith.constant dense<0.000000e+00> : vector<8x512xf32>
    %46 = tpu.matmul %45, %7, %cst_22 {dimension_numbers = #tpu.dot_dimension_numbers<[1], [0], [0], [1], [0, 0, 1, 1], [], []>} : vector<8x128xbf16>, vector<128x512xbf16>, vector<8x512xf32> -> vector<8x512xf32>
    %47 = arith.addf %44, %46 : vector<8x512xf32>
    %48 = arith.mulf %47, %13 : vector<8x512xf32>
    %49 = math.tanh %48 : vector<8x512xf32>
    %50 = arith.mulf %49, %13 : vector<8x512xf32>
    %51 = arith.addf %50, %16 : vector<8x512xf32>
    %52 = vector.extract_strided_slice %51 {offsets = [0, 0], sizes = [8, 128], strides = [1, 1]} : vector<8x512xf32> to vector<8x128xf32>
    %53 = vector.extract_strided_slice %51 {offsets = [0, 128], sizes = [8, 128], strides = [1, 1]} : vector<8x512xf32> to vector<8x128xf32>
    %54 = vector.extract_strided_slice %51 {offsets = [0, 256], sizes = [8, 128], strides = [1, 1]} : vector<8x512xf32> to vector<8x128xf32>
    %55 = vector.extract_strided_slice %51 {offsets = [0, 384], sizes = [8, 128], strides = [1, 1]} : vector<8x512xf32> to vector<8x128xf32>
    %56 = arith.mulf %53, %36 : vector<8x128xf32>
    %57 = arith.mulf %52, %55 : vector<8x128xf32>
    %58 = arith.addf %56, %57 : vector<8x128xf32>
    %59 = math.tanh %58 : vector<8x128xf32>
    %60 = arith.mulf %54, %59 : vector<8x128xf32>
    %61 = arith.index_cast %42 : i32 to index
    %c0_23 = arith.constant 0 : index
    %62 = vector.load %arg4[%61, %c0_23] : memref<32x128xf32, #tpu.memory_space<vmem>>, vector<8x128xf32>
    tpu.vector_store %arg4[%61, %c0_23], %60 {strides = array<i32>} : memref<32x128xf32, #tpu.memory_space<vmem>>, vector<8x128xf32>,
    %c2_i32 = arith.constant 2 : i32
    %c8_i32_24 = arith.constant 8 : i32
    %63 = arith.muli %c2_i32, %c8_i32_24 : i32
    %64 = tpu.assume_multiple %63, 8 : i32
    %65 = arith.index_cast %64 : i32 to index
    %c0_25 = arith.constant 0 : index
    %66 = vector.load %arg5[%65, %c0_25] : memref<32x512xf32, #tpu.memory_space<vmem>>, vector<8x512xf32>
    %67 = arith.truncf %60 : vector<8x128xf32> to vector<8x128xbf16>
    %cst_26 = arith.constant dense<0.000000e+00> : vector<8x512xf32>
    %68 = tpu.matmul %67, %7, %cst_26 {dimension_numbers = #tpu.dot_dimension_numbers<[1], [0], [0], [1], [0, 0, 1, 1], [], []>} : vector<8x128xbf16>, vector<128x512xbf16>, vector<8x512xf32> -> vector<8x512xf32>
    %69 = arith.addf %66, %68 : vector<8x512xf32>
    %70 = arith.mulf %69, %13 : vector<8x512xf32>
    %71 = math.tanh %70 : vector<8x512xf32>
    %72 = arith.mulf %71, %13 : vector<8x512xf32>
    %73 = arith.addf %72, %16 : vector<8x512xf32>
    %74 = vector.extract_strided_slice %73 {offsets = [0, 0], sizes = [8, 128], strides = [1, 1]} : vector<8x512xf32> to vector<8x128xf32>
    %75 = vector.extract_strided_slice %73 {offsets = [0, 128], sizes = [8, 128], strides = [1, 1]} : vector<8x512xf32> to vector<8x128xf32>
    %76 = vector.extract_strided_slice %73 {offsets = [0, 256], sizes = [8, 128], strides = [1, 1]} : vector<8x512xf32> to vector<8x128xf32>
    %77 = vector.extract_strided_slice %73 {offsets = [0, 384], sizes = [8, 128], strides = [1, 1]} : vector<8x512xf32> to vector<8x128xf32>
    %78 = arith.mulf %75, %58 : vector<8x128xf32>
    %79 = arith.mulf %74, %77 : vector<8x128xf32>
    %80 = arith.addf %78, %79 : vector<8x128xf32>
    %81 = math.tanh %80 : vector<8x128xf32>
    %82 = arith.mulf %76, %81 : vector<8x128xf32>
    %83 = arith.index_cast %64 : i32 to index
    %c0_27 = arith.constant 0 : index
    %84 = vector.load %arg4[%83, %c0_27] : memref<32x128xf32, #tpu.memory_space<vmem>>, vector<8x128xf32>
    tpu.vector_store %arg4[%83, %c0_27], %82 {strides = array<i32>} : memref<32x128xf32, #tpu.memory_space<vmem>>, vector<8x128xf32>,
    %c3_i32 = arith.constant 3 : i32
    %c8_i32_28 = arith.constant 8 : i32
    %85 = arith.muli %c3_i32, %c8_i32_28 : i32
    %86 = tpu.assume_multiple %85, 8 : i32
    %87 = arith.index_cast %86 : i32 to index
    %c0_29 = arith.constant 0 : index
    %88 = vector.load %arg5[%87, %c0_29] : memref<32x512xf32, #tpu.memory_space<vmem>>, vector<8x512xf32>
    %89 = arith.truncf %82 : vector<8x128xf32> to vector<8x128xbf16>
    %cst_30 = arith.constant dense<0.000000e+00> : vector<8x512xf32>
    %90 = tpu.matmul %89, %7, %cst_30 {dimension_numbers = #tpu.dot_dimension_numbers<[1], [0], [0], [1], [0, 0, 1, 1], [], []>} : vector<8x128xbf16>, vector<128x512xbf16>, vector<8x512xf32> -> vector<8x512xf32>
    %91 = arith.addf %88, %90 : vector<8x512xf32>
    %92 = arith.mulf %91, %13 : vector<8x512xf32>
    %93 = math.tanh %92 : vector<8x512xf32>
    %94 = arith.mulf %93, %13 : vector<8x512xf32>
    %95 = arith.addf %94, %16 : vector<8x512xf32>
    %96 = vector.extract_strided_slice %95 {offsets = [0, 0], sizes = [8, 128], strides = [1, 1]} : vector<8x512xf32> to vector<8x128xf32>
    %97 = vector.extract_strided_slice %95 {offsets = [0, 128], sizes = [8, 128], strides = [1, 1]} : vector<8x512xf32> to vector<8x128xf32>
    %98 = vector.extract_strided_slice %95 {offsets = [0, 256], sizes = [8, 128], strides = [1, 1]} : vector<8x512xf32> to vector<8x128xf32>
    %99 = vector.extract_strided_slice %95 {offsets = [0, 384], sizes = [8, 128], strides = [1, 1]} : vector<8x512xf32> to vector<8x128xf32>
    %100 = arith.mulf %97, %80 : vector<8x128xf32>
    %101 = arith.mulf %96, %99 : vector<8x128xf32>
    %102 = arith.addf %100, %101 : vector<8x128xf32>
    %103 = math.tanh %102 : vector<8x128xf32>
    %104 = arith.mulf %98, %103 : vector<8x128xf32>
    %105 = arith.index_cast %86 : i32 to index
    %c0_31 = arith.constant 0 : index
    %106 = vector.load %arg4[%105, %c0_31] : memref<32x128xf32, #tpu.memory_space<vmem>>, vector<8x128xf32>
    tpu.vector_store %arg4[%105, %c0_31], %104 {strides = array<i32>} : memref<32x128xf32, #tpu.memory_space<vmem>>, vector<8x128xf32>,
    %c4_i32 = arith.constant 4 : i32
    %c0_32 = arith.constant 0 : index
    %c0_33 = arith.constant 0 : index
    %107 = vector.load %arg6[%c0_32, %c0_33] : memref<8x128xf32, #tpu.memory_space<vmem>>, vector<8x128xf32>
    tpu.vector_store %arg6[%c0_32, %c0_33], %104 {strides = array<i32>} : memref<8x128xf32, #tpu.memory_space<vmem>>, vector<8x128xf32>,
    %c0_34 = arith.constant 0 : index
    %c0_35 = arith.constant 0 : index
    %108 = vector.load %arg7[%c0_34, %c0_35] : memref<8x128xf32, #tpu.memory_space<vmem>>, vector<8x128xf32>
    tpu.vector_store %arg7[%c0_34, %c0_35], %102 {strides = array<i32>} : memref<8x128xf32, #tpu.memory_space<vmem>>, vector<8x128xf32>,
    return
  }
  func.func @transform_0(%arg0: i32) -> (i32, i32) {
    %c0_i32 = arith.constant 0 : i32
    %c0_i32_0 = arith.constant 0 : i32
    return %arg0, %c0_i32 : i32, i32
  }
  func.func @transform_1(%arg0: i32) -> (i32, i32) {
    %c0_i32 = arith.constant 0 : i32
    %c0_i32_0 = arith.constant 0 : i32
    %c0_i32_1 = arith.constant 0 : i32
    return %c0_i32, %c0_i32_0 : i32, i32
  }
  func.func @transform_2(%arg0: i32) -> (i32, i32) {
    %c0_i32 = arith.constant 0 : i32
    %c0_i32_0 = arith.constant 0 : i32
    %c0_i32_1 = arith.constant 0 : i32
    return %c0_i32, %c0_i32_0 : i32, i32
  }
  func.func @transform_3(%arg0: i32) -> (i32, i32) {
    %c0_i32 = arith.constant 0 : i32
    %c0_i32_0 = arith.constant 0 : i32
    return %arg0, %c0_i32 : i32, i32
  }
}

</mosaic_0001>

<bundles_post_ra>
// kernel: tpu_custom_call.1
= control target key start
LH: loop header
LB: loop body
LE: loop exit
PB: predicated region body
PF: predicated region fallthrough
CT: control target
= control target key end

     0   :  { %8 = vsyncpa [#allocation6], 0  ;;  %s1866_s0 = inlined_call_operand.vmem [shape: bf16[64,16], index: 0, kind: input, shape index: {}]   ;;  %s1867_s1 = inlined_call_operand.vmem [shape: bf16[16,512], index: 1, kind: input, shape index: {}]   ;;  %s1868_s2 = inlined_call_operand.hbm [shape: bf16[128,512], index: 2, kind: input, shape index: {}]   ;;  %s1869_s3 = inlined_call_operand.hbm [shape: f32[64,128], index: 3, kind: output, shape index: {}]  }
   0x1   :  { %9 = vsyncpa [#allocation7], 0 }
   0x2   :  { %11 = vsyncpa [#allocation7 + $0x1], 0  ;;  %s1465_s12 = smov 0   ;;  %s1467_s13 = smov 0  }
   0x3   :  { %s1469_s14 = smov 0   ;;  %s1471_s15 = smov 0  }
   0x4 LB: > { %s1486_s16 = sadd.s32 4294967295, %s1435_s15   ;;  %s1132_s17 = sadd.s32 4294967294, %s1435_s15   ;;  %s1435_s15 = sphi %s1471_s15, %s1885_s15   ;;  %s1431_s14 = sphi %s1469_s14, %s1884_s14   ;;  %s1427_s13 = sphi %s1467_s13, %s1883_s13   ;;  %s1423_s12 = sphi %s1465_s12, %s1882_s12  }
   0x5   : > { %s1490_s18 = sadd.s32 1, %s1435_s15   ;;  %s92_s19 = sadd.s32 1, %s1431_s14 }
   0x6   : > { %s89_s20 = ssub.s32 %s1435_s15, %s1490_s18  ;;  %p102_p0 = scmp.ne.s32.totalorder %s1431_s14, %s1427_s13 }
   0x7   : > { %p90_p1 = scmp.eq.s32.totalorder %s89_s20, 0  ;;  %p103_p2 = scmp.eq.s32.totalorder %s1486_s16, 1 }
   0x8   : > { %p108_p3 = scmp.ne.s32.totalorder %s1427_s13, %s1423_s12  ;;  %p109_p4 = scmp.eq.s32.totalorder %s1132_s17, 1 }
   0x9   : > { %s1501_s21 = scalar_select %p90_p1, %s1431_s14, %s92_s19  }
   0xa   : > { %p1503_p5 = por %p103_p2, %p102_p0  ;;  %p1507_p6 = por %p109_p4, %p108_p3 }
   0xb   : > { %p1133_p7 = scmp.ge.s32.totalorder %s1435_s15, 1  ;;  %p116_p8 = scmp.lt.s32.totalorder %s1435_s15, 3 }
   0xc   : > { %s1873_s23 = scalar_select %p1507_p6, 1, 0 }
   0xd   : > { %p1207_p10 = scmp.eq.s32.totalorder %s1486_s16, 0  ;;  %p1515_p11 = pnand %p1133_p7, %p116_p8 }
   0xe   : > { %s1437_s25 = smov [#allocation5]  }
   0xf   : > { %s131_s26 = sshll.u32 %s1437_s25, 4  ;;  %p1199_p12 = pneg %p1515_p11  ;;  %s132_s26 = int_to_ptr.vmem [resolvable:$true] %s131_s26 }
  0x10   : > { %s1356_s27 = scalar_lea.vmem %s132_s26, 4096  ;;  %p1364_p4 = scmp.lt.s32.totalorder %s132_s26, %s132_s26 }
  0x11   : > { %p1200_p13 = pnand %p1207_p10, %p1199_p12  ;;  %p1357_p1 = scmp.ne.s32.totalorder %s132_s26, %s1356_s27 }
  0x12   : > { %p1365_p9 = scmp.lt.s32.totalorder %s1356_s27, %s1356_s27 }
  0x13   : > { %p1347_p0 = pneg %p1200_p13 }
  0x14   : > { %p1366_p6 = por %p1365_p9, %p1364_p4 }
  0x15   : > { %p1359_p2 = pnand %p1357_p1, %p1347_p0 }
  0x17   : > { %p1360_p3 = pneg %p1359_p2 }
  0x19   : > { %p1367_p7 = pnand %p1366_p6, %p1360_p3 }
  0x1b   : > { %1370 = shalt.err (!%p1367_p7)
}
  0x1c   : > { %s1438_s28 = smov 256   ;;  %s1439_s29 = smov 16  }
  0x1d   : > { %1202 = dma.hbm_to_vmem [thread:$0]  (!%p1200_p13), %s1868_s2, 4096, %s132_s26, [#allocation6], %s1438_s28, %s1438_s28, %s1439_s29  }
  0x1e   : > { %156 = sbr.rel (%p1515_p11) target bundleno = 1053 (0x41d), region = 32 }
  0x23   : > { %1414 = dma.done.wait (%p1207_p10), [#allocation6], 4096  }
  0x24   : > { %1416 = vsyncadd (%p1207_p10), [#allocation6], 4294963200  ;;  %s177_s5 = sand.u32 1, %s1427_s13   ;;  %s1139_s6 = sshll.u32 %s1486_s16, 2 }
  0x25   : > { %s1138_s7 = sshll.u32 %s177_s5, 5  ;;  %p181_p6 = scmp.lt.s32.totalorder %s1139_s6, 7 }
  0x26   : > { %s1541_s17 = scalar_lea.vmem [#allocation8], %s1138_s7  ;;  %p1875_p8 = scmp.ne.s32.totalorder %s1486_s16, 0 }
  0x27   : > { %s1887_s6 = smov (!%p181_p6, %s1139_s6), 7 }
  0x28   : > { %s1140_s8 = sshll.u32 %s1887_s6, 2  ;;  %191 = sbr.rel (%p1875_p8) target bundleno = 47 (0x2f), region = 40 }
  0x29   : > { %s1539_s11 = scalar_lea.vmem %s1866_s0, %s1140_s8 }
  0x2d   : > { %v1440_v0 = vmov 0.0  }
  0x2e   : > { %192 = vst [vmem:[#allocation3] sm:$0xff] %v1440_v0  ;;  %193 = vst [vmem:[#allocation4] sm:$0xff] %v1440_v0 }
  0x2f PF: > { %v1249_v1 = vld [vmem:[%s1867_s1 + $0x4] ss:$16 sps:$4 sm:$0xff]   ;;  %v1251_v2 = vld [vmem:[%s1867_s1 + $0xc] ss:$16 sps:$4 sm:$0xff]   ;;  %v1870_v3 = vmov 0   ;;  %vm232_vm0 = vcmask 130048  }
  0x30   : > { %271 = vmatprep.mubr.bf16.mxu0 %v1870_v3  ;;  %324 = vmatprep.mubr.bf16.mxu1 %v1870_v3  ;;  %v1253_v4 = vld [vmem:[%s1867_s1] ss:$16 sps:$4 sm:$0xff]   ;;  %v1254_v5 = vld [vmem:[%s1867_s1 + $0x8] ss:$16 sps:$4 sm:$0xff]   ;;  %v1560_v7 = vld [vmem:[#allocation5 + $0xe4] ss:$16 sps:$4 sm:$0xff]  }
  0x31   : > { %253 = vmatprep.subr.bf16.mxu0 %v1249_v1  ;;  %306 = vmatprep.subr.bf16.mxu1 %v1251_v2  ;;  %v1255_v6 = vld [vmem:[%s1539_s11] sm:$0xff]   ;;  %v1562_v8 = vld [vmem:[#allocation5 + $0xec] ss:$16 sps:$4 sm:$0xff]   ;;  %v1567_v10 = vld [vmem:[#allocation5 + $0xe8] ss:$16 sps:$4 sm:$0xff]   ;;  %s1192_s30 = sshll.u32 %s1486_s16, 9 }
  0x32   : > { %254 = vmatpush1.bf16.msra.mxu0 %v1253_v4  ;;  %307 = vmatpush1.bf16.msra.mxu1 %v1254_v5  ;;  %v1564_v9 = vld [vmem:[#allocation5 + $0xe0] ss:$16 sps:$4 sm:$0xff]   ;;  %v1571_v11 = vld [vmem:[#allocation5 + $0xc4] ss:$16 sps:$4 sm:$0xff]   ;;  %v1575_v12 = vld [vmem:[#allocation5 + $0xcc] ss:$16 sps:$4 sm:$0xff]   ;;  %s1819_s8 = scalar_lea.hbm %s1869_s3, %s1192_s30 }
  0x33   : > { %580 = vmatprep.subr.bf16.mxu0 %v1560_v7  ;;  %621 = vmatprep.subr.bf16.mxu1 %v1562_v8  ;;  %v1577_v13 = vld [vmem:[#allocation5 + $0xc0] ss:$16 sps:$4 sm:$0xff]   ;;  %v1579_v14 = vld [vmem:[#allocation5 + $0xc8] ss:$16 sps:$4 sm:$0xff]   ;;  %v1583_v15 = vld [vmem:[#allocation5 + $0xa4] ss:$16 sps:$4 sm:$0xff]  }
  0x34   : > { %v1586_v16 = vld [vmem:[#allocation5 + $0xac] ss:$16 sps:$4 sm:$0xff]   ;;  %v1591_v17 = vld [vmem:[#allocation5 + $0xa0] ss:$16 sps:$4 sm:$0xff]   ;;  %v1595_v18 = vld [vmem:[#allocation5 + $0xa8] ss:$16 sps:$4 sm:$0xff]  }
  0x35   : > { %1148 = vmatmul.mubr.msk.bf16.vlgmr.msra.gmra.mxu0 %vm232_vm0, %v1255_v6  ;;  %1150 = vmatmul.mubr.msk.bf16.vlgmr.msra.gmra.mxu1 %vm232_vm0, %v1255_v6  ;;  %v1597_v19 = vld [vmem:[#allocation5 + $0x84] ss:$16 sps:$4 sm:$0xff]   ;;  %v1600_v20 = vld [vmem:[#allocation5 + $0x8c] ss:$16 sps:$4 sm:$0xff]   ;;  %v1603_v21 = vld [vmem:[#allocation5 + $0x80] ss:$16 sps:$4 sm:$0xff]  }
  0x36   : > { %581 = vmatpush1.bf16.msra.mxu0 %v1564_v9  ;;  %622 = vmatpush1.bf16.msra.mxu1 %v1567_v10  ;;  %v1605_v22 = vld [vmem:[#allocation5 + $0x88] ss:$16 sps:$4 sm:$0xff]   ;;  %v1607_v23 = vld [vmem:[#allocation5 + $0x64] ss:$16 sps:$4 sm:$0xff]   ;;  %v1613_v25 = vld [vmem:[#allocation5 + $0x6c] ss:$16 sps:$4 sm:$0xff]  }
  0x37   : > { %582 = vmatprep.subr.bf16.mxu0 %v1571_v11  ;;  %623 = vmatprep.subr.bf16.mxu1 %v1575_v12  ;;  %v1286_v24 = vld [vmem:[%s1539_s11 + $0x8] sm:$0xff]   ;;  %v1618_v26 = vld [vmem:[#allocation5 + $0x60] ss:$16 sps:$4 sm:$0xff]   ;;  %v1625_v28 = vld [vmem:[#allocation5 + $0x44] ss:$16 sps:$4 sm:$0xff]   ;;  %s1055_s4 = sshll.u32 %s1541_s17, 4  ;;  %s1821_s4 = int_to_ptr.vmem [resolvable:$true] %s1055_s4 }
  0x38   : > { %281 = vmatprep.mubr.bf16.mxu0 %v1870_v3  ;;  %334 = vmatprep.mubr.bf16.mxu1 %v1870_v3  ;;  %v1620_v27 = vld [vmem:[#allocation5 + $0x68] ss:$16 sps:$4 sm:$0xff]   ;;  %v1628_v29 = vld [vmem:[#allocation5 + $0x4c] ss:$16 sps:$4 sm:$0xff]   ;;  %v1632_v30 = vld [vmem:[#allocation5 + $0x40] ss:$16 sps:$4 sm:$0xff]  }
  0x39   : > { %v1636_v31 = vld [vmem:[#allocation5 + $0x48] ss:$16 sps:$4 sm:$0xff]   ;;  %v1638_v32 = vld [vmem:[#allocation5 + $0x24] ss:$16 sps:$4 sm:$0xff]   ;;  %v1641_v33 = vld [vmem:[#allocation5 + $0x2c] ss:$16 sps:$4 sm:$0xff]  }
  0x3a   : > { %583 = vmatpush1.bf16.msra.mxu0 %v1577_v13  ;;  %624 = vmatpush1.bf16.msra.mxu1 %v1579_v14  ;;  %v1644_v34 = vld [vmem:[#allocation5 + $0x20] ss:$16 sps:$4 sm:$0xff]   ;;  %v1648_v35 = vld [vmem:[#allocation5 + $0x28] ss:$16 sps:$4 sm:$0xff]   ;;  %v1650_v36 = vld [vmem:[#allocation5 + $0x4] ss:$16 sps:$4 sm:$0xff]  }
  0x3b   : > { %584 = vmatprep.subr.bf16.mxu0 %v1583_v15  ;;  %625 = vmatprep.subr.bf16.mxu1 %v1586_v16  ;;  %v1653_v37 = vld [vmem:[#allocation5 + $0xc] ss:$16 sps:$4 sm:$0xff]   ;;  %v1656_v38 = vld [vmem:[#allocation5] ss:$16 sps:$4 sm:$0xff]   ;;  %v1660_v40 = vld [vmem:[#allocation5 + $0x8] ss:$16 sps:$4 sm:$0xff]  }
  0x3c   : > { %v410_v39 = vld [vmem:[#allocation3] sm:$0xff]  ;;  %s1826_s9 = scalar_lea.sflag [#allocation7], %s177_s5  ;;  %s1371_s16 = scalar_lea.vmem %s1821_s4, 512 }
  0x3d   : > { %1149 = vmatmul.mubr.msk.bf16.gmra.mxu0 %vm232_vm0, %v1286_v24  ;;  %1151 = vmatmul.mubr.msk.bf16.gmra.mxu1 %vm232_vm0, %v1286_v24  ;;  %v419_v41 = vpack.c.bf16 %v410_v39, %v410_v39  ;;  %p1372_p9 = scmp.ne.s32.totalorder %s1821_s4, %s1371_s16  ;;  %s1442_s10 = smov [#allocation8]  }
  0x3e   : > { %585 = vmatpush1.bf16.msra.mxu0 %v1591_v17  ;;  %626 = vmatpush1.bf16.msra.mxu1 %v1595_v18  ;;  %s1375_s11 = sshll.u32 %s1442_s10, 4  ;;  %s1376_s11 = int_to_ptr.vmem [resolvable:$false] %s1375_s11 }
  0x3f   : > { %586 = vmatprep.subr.bf16.mxu0 %v1597_v19  ;;  %627 = vmatprep.subr.bf16.mxu1 %v1600_v20  ;;  %p1373_p10 = pnand %p1372_p9, %p1503_p5  ;;  %s1377_s19 = scalar_lea.vmem %s1376_s11, 1024 }
  0x40   : > { %612 = vmatprep.mubr.bf16.mxu0 %v1870_v3  ;;  %653 = vmatprep.mubr.bf16.mxu1 %v1870_v3  ;;  %p1378_p12 = scmp.lt.s32.totalorder %s1821_s4, %s1376_s11  ;;  %p1379_p13 = scmp.lt.s32.totalorder %s1377_s19, %s1371_s16 }
  0x41   : > { %p1374_p11 = pneg %p1373_p10 }
  0x42   : > { %587 = vmatpush1.bf16.msra.mxu0 %v1603_v21  ;;  %628 = vmatpush1.bf16.msra.mxu1 %v1605_v22  ;;  %p1380_p0 = por %p1379_p13, %p1378_p12 }
  0x43   : > { %588 = vmatprep.subr.bf16.mxu0 %v1607_v23  ;;  %629 = vmatprep.subr.bf16.mxu1 %v1613_v25 }
  0x44   : > { %p1381_p1 = pnand %p1380_p0, %p1374_p11 }
  0x46   : > { %589 = vmatpush1.bf16.msra.mxu0 %v1618_v26  ;;  %630 = vmatpush1.bf16.msra.mxu1 %v1620_v27 }
  0x47   : > { %590 = vmatprep.subr.bf16.mxu0 %v1625_v28  ;;  %631 = vmatprep.subr.bf16.mxu1 %v1628_v29 }
  0x4a   : > { %591 = vmatpush1.bf16.msra.mxu0 %v1632_v30  ;;  %632 = vmatpush1.bf16.msra.mxu1 %v1636_v31 }
  0x4b   : > { %592 = vmatprep.subr.bf16.mxu0 %v1638_v32  ;;  %633 = vmatprep.subr.bf16.mxu1 %v1641_v33 }
  0x4e   : > { %593 = vmatpush1.bf16.msra.mxu0 %v1644_v34  ;;  %634 = vmatpush1.bf16.msra.mxu1 %v1648_v35 }
  0x4f   : > { %594 = vmatprep.subr.bf16.mxu0 %v1650_v36  ;;  %635 = vmatprep.subr.bf16.mxu1 %v1653_v37 }
  0x52   : > { %595 = vmatpush1.bf16.msra.mxu0 %v1656_v38  ;;  %636 = vmatpush1.bf16.msra.mxu1 %v1660_v40 }
  0x53   : > { %696 = vmatprep.subr.bf16.mxu0 %v1560_v7  ;;  %737 = vmatprep.subr.bf16.mxu1 %v1562_v8 }
  0x55   : > { %613 = vmatmul.mubr.bf16.vlgmr.msra.gmra.mxu0 %v419_v41  ;;  %654 = vmatmul.mubr.bf16.vlgmr.msra.gmra.mxu1 %v419_v41 }
  0x56   : > { %697 = vmatpush1.bf16.msra.mxu0 %v1564_v9  ;;  %738 = vmatpush1.bf16.msra.mxu1 %v1567_v10 }
  0x57   : > { %698 = vmatprep.subr.bf16.mxu0 %v1571_v11  ;;  %739 = vmatprep.subr.bf16.mxu1 %v1575_v12 }
  0x58   : > { %728 = vmatprep.mubr.bf16.mxu0 %v1870_v3  ;;  %769 = vmatprep.mubr.bf16.mxu1 %v1870_v3 }
  0x5a   : > { %699 = vmatpush1.bf16.msra.mxu0 %v1577_v13  ;;  %740 = vmatpush1.bf16.msra.mxu1 %v1579_v14 }
  0x5b   : > { %700 = vmatprep.subr.bf16.mxu0 %v1583_v15  ;;  %741 = vmatprep.subr.bf16.mxu1 %v1586_v16 }
  0x5e   : > { %701 = vmatpush1.bf16.msra.mxu0 %v1591_v17  ;;  %742 = vmatpush1.bf16.msra.mxu1 %v1595_v18 }
  0x5f   : > { %702 = vmatprep.subr.bf16.mxu0 %v1597_v19  ;;  %743 = vmatprep.subr.bf16.mxu1 %v1600_v20 }
  0x62   : > { %703 = vmatpush1.bf16.msra.mxu0 %v1603_v21  ;;  %744 = vmatpush1.bf16.msra.mxu1 %v1605_v22 }
  0x63   : > { %704 = vmatprep.subr.bf16.mxu0 %v1607_v23  ;;  %745 = vmatprep.subr.bf16.mxu1 %v1613_v25 }
  0x66   : > { %705 = vmatpush1.bf16.msra.mxu0 %v1618_v26  ;;  %746 = vmatpush1.bf16.msra.mxu1 %v1620_v27 }
  0x67   : > { %706 = vmatprep.subr.bf16.mxu0 %v1625_v28  ;;  %747 = vmatprep.subr.bf16.mxu1 %v1628_v29 }
  0x6a   : > { %707 = vmatpush1.bf16.msra.mxu0 %v1632_v30  ;;  %748 = vmatpush1.bf16.msra.mxu1 %v1636_v31 }
  0x6b   : > { %708 = vmatprep.subr.bf16.mxu0 %v1638_v32  ;;  %749 = vmatprep.subr.bf16.mxu1 %v1641_v33 }
  0x6e   : > { %709 = vmatpush1.bf16.msra.mxu0 %v1644_v34  ;;  %750 = vmatpush1.bf16.msra.mxu1 %v1648_v35 }
  0x6f   : > { %710 = vmatprep.subr.bf16.mxu0 %v1650_v36  ;;  %751 = vmatprep.subr.bf16.mxu1 %v1653_v37 }
  0x72   : > { %711 = vmatpush1.bf16.msra.mxu0 %v1656_v38  ;;  %752 = vmatpush1.bf16.msra.mxu1 %v1660_v40 }
  0x73   : > { %813 = vmatprep.subr.bf16.mxu0 %v1560_v7  ;;  %854 = vmatprep.subr.bf16.mxu1 %v1562_v8 }
  0xf5   : > { %v326_v42 = vpop.f32.mrf.mxu1  ;;  %v273_v43 = vpop.f32.mrf.mxu0 }
  0xf7   : > { %v328_v44 = vpop.f32.mrf.mxu1  ;;  %v275_v45 = vpop.f32.mrf.mxu0 }
  0xf9   : > { %v1701_v46 = vpop.f32.mrf.mxu1  ;;  %v1703_v47 = vpop.f32.mrf.mxu0 }
  0xfb   : > { %v1705_v48 = vpop.f32.mrf.mxu1  ;;  %v1707_v49 = vpop.f32.mrf.mxu0 }
  0xfd   : > { %v1709_v50 = vpop.f32.mrf.mxu1  ;;  %v1711_v51 = vpop.f32.mrf.mxu0 }
  0xff   : > { %v1713_v52 = vpop.f32.mrf.mxu1  ;;  %v1715_v53 = vpop.f32.mrf.mxu0 }
 0x101   : > { %v1717_v54 = vpop.f32.mrf.mxu1  ;;  %v1719_v55 = vpop.f32.mrf.mxu0 }
 0x102   : > { %1876 = vst [vmem:[#allocation11_spill] sm:$0xff] %v1717_v54 }
 0x103   : > { %v1721_v56 = vpop.f32.mrf.mxu1  ;;  %v1723_v57 = vpop.f32.mrf.mxu0 }
 0x104   : > { %1877 = vst [vmem:[#allocation12_spill] sm:$0xff] %v1721_v56 }
 0x115   : > { %v614_v58 = vpop.f32.mrf.mxu0  ;;  %v655_v60 = vpop.f32.mrf.mxu1 }
 0x116   : > { %v662_v59 = vadd.f32 %v614_v58, %v273_v43  ;;  %v664_v39 = vadd.f32 %v655_v60, %v326_v42 }
 0x117   : > { %v616_v61 = vpop.f32.mrf.mxu0  ;;  %v657_v0 = vpop.f32.mrf.mxu1 }
 0x118   : > { %v666_v62 = vmul.f32 0.5, %v662_v59  ;;  %v663_v63 = vadd.f32 %v616_v61, %v275_v45  ;;  %v665_v6 = vadd.f32 %v657_v0, %v328_v44  ;;  %v668_v41 = vmul.f32 0.5, %v664_v39  ;;  %v411_v45 = vld [vmem:[#allocation4] sm:$0xff] }
 0x119   : > { %v618_v1 = vpop.f32.mrf.mxu0  ;;  %v659_v4 = vpop.f32.mrf.mxu1 }
 0x11a   : > { %1305 = vtanh.f32 %v666_v62  ;;  %v667_v2 = vmul.f32 0.5, %v663_v63 }
 0x11b   : > { %v619_v5 = vpop.f32.mrf.mxu0  ;;  %v660_v24 = vpop.f32.mrf.mxu1 }
 0x11c   : > { %1307 = vtanh.f32 %v667_v2 }
 0x11d   : > { %1309 = vtanh.f32 %v665_v6 }
 0x11e   : > { %1311 = vtanh.f32 %v668_v41 }
 0x127   : > { %v1306_v3 = vpop.eup %1305 }
 0x128   : > { %v674_v54 = vmul.f32 0.5, %v1306_v3 }
 0x129   : > { %v1308_v56 = vpop.eup %1307 }
 0x12a   : > { %v678_v43 = vadd.f32 0.5, %v674_v54  ;;  %v675_v58 = vmul.f32 0.5, %v1308_v56  ;;  %v1310_v61 = vpop.eup %1309  ;;  %v1878_v54 = vmov 0  }
 0x12b   : > { %v1312_v44 = vpop.eup %1311 }
 0x12c   : > { %v679_v59 = vadd.f32 0.5, %v675_v58  ;;  %v683_v63 = vmul.f32 %v1310_v61, %v678_v43  ;;  %v676_v0 = vmul.f32 0.5, %v1312_v44 }
 0x12e   : > { %v682_v62 = vmul.f32 %v679_v59, %v411_v45  ;;  %v680_v42 = vadd.f32 0.5, %v676_v0 }
 0x130   : > { %v1725_v1 = vadd.f32 %v683_v63, %v682_v62 }
 0x132   : > { %1313 = vtanh.f32 %v1725_v1 }
 0x13f   : > { %v1314_v60 = vpop.eup %1313 }
 0x140   : > { %v686_v2 = vmul.f32 %v1314_v60, %v680_v42 }
 0x142   : > { %687 = vst [vmem:[%s1541_s17] sm:$0xff] %v686_v2  ;;  %v695_v3 = vpack.c.bf16 %v686_v2, %v686_v2 }
 0x144   : > { %729 = vmatmul.mubr.bf16.vlgmr.msra.gmra.mxu0 %v695_v3  ;;  %770 = vmatmul.mubr.bf16.vlgmr.msra.gmra.mxu1 %v695_v3 }
 0x145   : > { %814 = vmatpush1.bf16.msra.mxu0 %v1564_v9  ;;  %855 = vmatpush1.bf16.msra.mxu1 %v1567_v10 }
 0x146   : > { %815 = vmatprep.subr.bf16.mxu0 %v1571_v11  ;;  %856 = vmatprep.subr.bf16.mxu1 %v1575_v12 }
 0x147   : > { %845 = vmatprep.mubr.bf16.mxu0 %v1878_v54  ;;  %886 = vmatprep.mubr.bf16.mxu1 %v1878_v54 }
 0x149   : > { %816 = vmatpush1.bf16.msra.mxu0 %v1577_v13  ;;  %857 = vmatpush1.bf16.msra.mxu1 %v1579_v14 }
 0x14a   : > { %817 = vmatprep.subr.bf16.mxu0 %v1583_v15  ;;  %858 = vmatprep.subr.bf16.mxu1 %v1586_v16 }
 0x14d   : > { %818 = vmatpush1.bf16.msra.mxu0 %v1591_v17  ;;  %859 = vmatpush1.bf16.msra.mxu1 %v1595_v18 }
 0x14e   : > { %819 = vmatprep.subr.bf16.mxu0 %v1597_v19  ;;  %860 = vmatprep.subr.bf16.mxu1 %v1600_v20 }
 0x151   : > { %820 = vmatpush1.bf16.msra.mxu0 %v1603_v21  ;;  %861 = vmatpush1.bf16.msra.mxu1 %v1605_v22 }
 0x152   : > { %821 = vmatprep.subr.bf16.mxu0 %v1607_v23  ;;  %862 = vmatprep.subr.bf16.mxu1 %v1613_v25 }
 0x155   : > { %822 = vmatpush1.bf16.msra.mxu0 %v1618_v26  ;;  %863 = vmatpush1.bf16.msra.mxu1 %v1620_v27 }
 0x156   : > { %823 = vmatprep.subr.bf16.mxu0 %v1625_v28  ;;  %864 = vmatprep.subr.bf16.mxu1 %v1628_v29 }
 0x159   : > { %824 = vmatpush1.bf16.msra.mxu0 %v1632_v30  ;;  %865 = vmatpush1.bf16.msra.mxu1 %v1636_v31 }
 0x15a   : > { %825 = vmatprep.subr.bf16.mxu0 %v1638_v32  ;;  %866 = vmatprep.subr.bf16.mxu1 %v1641_v33 }
 0x15d   : > { %826 = vmatpush1.bf16.msra.mxu0 %v1644_v34  ;;  %867 = vmatpush1.bf16.msra.mxu1 %v1648_v35 }
 0x15e   : > { %827 = vmatprep.subr.bf16.mxu0 %v1650_v36  ;;  %868 = vmatprep.subr.bf16.mxu1 %v1653_v37 }
 0x161   : > { %828 = vmatpush1.bf16.msra.mxu0 %v1656_v38  ;;  %869 = vmatpush1.bf16.msra.mxu1 %v1660_v40 }
 0x162   : > { %930 = vmatprep.subr.bf16.mxu0 %v1560_v7  ;;  %971 = vmatprep.subr.bf16.mxu1 %v1562_v8 }
 0x204   : > { %v730_v56 = vpop.f32.mrf.mxu0  ;;  %v771_v4 = vpop.f32.mrf.mxu1 }
 0x205   : > { %v778_v5 = vadd.f32 %v730_v56, %v1703_v47  ;;  %v780_v8 = vadd.f32 %v771_v4, %v1701_v46 }
 0x206   : > { %v732_v6 = vpop.f32.mrf.mxu0  ;;  %v773_v24 = vpop.f32.mrf.mxu1 }
 0x207   : > { %v782_v39 = vmul.f32 0.5, %v778_v5  ;;  %v779_v41 = vadd.f32 %v732_v6, %v1707_v49  ;;  %v781_v7 = vadd.f32 %v773_v24, %v1705_v48  ;;  %v784_v62 = vmul.f32 0.5, %v780_v8 }
 0x208   : > { %v734_v43 = vpop.f32.mrf.mxu0  ;;  %v775_v58 = vpop.f32.mrf.mxu1 }
 0x209   : > { %1315 = vtanh.f32 %v782_v39  ;;  %v783_v45 = vmul.f32 0.5, %v779_v41 }
 0x20a   : > { %v735_v59 = vpop.f32.mrf.mxu0  ;;  %v776_v61 = vpop.f32.mrf.mxu1 }
 0x20b   : > { %1317 = vtanh.f32 %v783_v45 }
 0x20c   : > { %1319 = vtanh.f32 %v781_v7  ;;  %v1879_v7 = vld [vmem:[#allocation12_spill] sm:$0xff] }
 0x20d   : > { %1321 = vtanh.f32 %v784_v62  ;;  %v1880_v62 = vld [vmem:[#allocation11_spill] sm:$0xff] }
 0x216   : > { %v1316_v63 = vpop.eup %1315 }
 0x217   : > { %v790_v47 = vmul.f32 0.5, %v1316_v63 }
 0x218   : > { %v1318_v44 = vpop.eup %1317 }
 0x219   : > { %v794_v0 = vadd.f32 0.5, %v790_v47  ;;  %v791_v49 = vmul.f32 0.5, %v1318_v44  ;;  %v1320_v60 = vpop.eup %1319 }
 0x21a   : > { %v1322_v48 = vpop.eup %1321 }
 0x21b   : > { %v795_v42 = vadd.f32 0.5, %v791_v49  ;;  %v799_v3 = vmul.f32 %v1320_v60, %v794_v0  ;;  %v792_v5 = vmul.f32 0.5, %v1322_v48 }
 0x21d   : > { %v798_v2 = vmul.f32 %v795_v42, %v1725_v1  ;;  %v796_v46 = vadd.f32 0.5, %v792_v5 }
 0x21f   : > { %v1768_v56 = vadd.f32 %v799_v3, %v798_v2 }
 0x221   : > { %1323 = vtanh.f32 %v1768_v56 }
 0x22e   : > { %v1324_v4 = vpop.eup %1323 }
 0x22f   : > { %v802_v6 = vmul.f32 %v1324_v4, %v796_v46 }
 0x231   : > { %1184 = vst [vmem:[%s1541_s17 + $0x8] sm:$0xff] %v802_v6  ;;  %v812_v24 = vpack.c.bf16 %v802_v6, %v802_v6 }
 0x233   : > { %846 = vmatmul.mubr.bf16.vlgmr.msra.gmra.mxu0 %v812_v24  ;;  %887 = vmatmul.mubr.bf16.vlgmr.msra.gmra.mxu1 %v812_v24 }
 0x234   : > { %931 = vmatpush1.bf16.msra.mxu0 %v1564_v9  ;;  %972 = vmatpush1.bf16.msra.mxu1 %v1567_v10 }
 0x235   : > { %932 = vmatprep.subr.bf16.mxu0 %v1571_v11  ;;  %973 = vmatprep.subr.bf16.mxu1 %v1575_v12 }
 0x236   : > { %962 = vmatprep.mubr.bf16.mxu0 %v1878_v54  ;;  %1003 = vmatprep.mubr.bf16.mxu1 %v1878_v54 }
 0x238   : > { %933 = vmatpush1.bf16.msra.mxu0 %v1577_v13  ;;  %974 = vmatpush1.bf16.msra.mxu1 %v1579_v14 }
 0x239   : > { %934 = vmatprep.subr.bf16.mxu0 %v1583_v15  ;;  %975 = vmatprep.subr.bf16.mxu1 %v1586_v16 }
 0x23c   : > { %935 = vmatpush1.bf16.msra.mxu0 %v1591_v17  ;;  %976 = vmatpush1.bf16.msra.mxu1 %v1595_v18 }
 0x23d   : > { %936 = vmatprep.subr.bf16.mxu0 %v1597_v19  ;;  %977 = vmatprep.subr.bf16.mxu1 %v1600_v20 }
 0x240   : > { %937 = vmatpush1.bf16.msra.mxu0 %v1603_v21  ;;  %978 = vmatpush1.bf16.msra.mxu1 %v1605_v22 }
 0x241   : > { %938 = vmatprep.subr.bf16.mxu0 %v1607_v23  ;;  %979 = vmatprep.subr.bf16.mxu1 %v1613_v25 }
 0x244   : > { %939 = vmatpush1.bf16.msra.mxu0 %v1618_v26  ;;  %980 = vmatpush1.bf16.msra.mxu1 %v1620_v27 }
 0x245   : > { %940 = vmatprep.subr.bf16.mxu0 %v1625_v28  ;;  %981 = vmatprep.subr.bf16.mxu1 %v1628_v29 }
 0x248   : > { %941 = vmatpush1.bf16.msra.mxu0 %v1632_v30  ;;  %982 = vmatpush1.bf16.msra.mxu1 %v1636_v31 }
 0x249   : > { %942 = vmatprep.subr.bf16.mxu0 %v1638_v32  ;;  %983 = vmatprep.subr.bf16.mxu1 %v1641_v33 }
 0x24c   : > { %943 = vmatpush1.bf16.msra.mxu0 %v1644_v34  ;;  %984 = vmatpush1.bf16.msra.mxu1 %v1648_v35 }
 0x24d   : > { %944 = vmatprep.subr.bf16.mxu0 %v1650_v36  ;;  %985 = vmatprep.subr.bf16.mxu1 %v1653_v37 }
 0x250   : > { %945 = vmatpush1.bf16.msra.mxu0 %v1656_v38  ;;  %986 = vmatpush1.bf16.msra.mxu1 %v1660_v40 }
 0x2f3   : > { %v847_v9 = vpop.f32.mrf.mxu0  ;;  %v888_v10 = vpop.f32.mrf.mxu1 }
 0x2f4   : > { %v895_v11 = vadd.f32 %v847_v9, %v1711_v51  ;;  %v897_v22 = vadd.f32 %v888_v10, %v1709_v50 }
 0x2f5   : > { %v849_v12 = vpop.f32.mrf.mxu0  ;;  %v890_v13 = vpop.f32.mrf.mxu1 }
 0x2f6   : > { %v899_v14 = vmul.f32 0.5, %v895_v11  ;;  %v896_v15 = vadd.f32 %v849_v12, %v1715_v53  ;;  %v898_v21 = vadd.f32 %v890_v13, %v1713_v52  ;;  %v901_v23 = vmul.f32 0.5, %v897_v22 }
 0x2f7   : > { %v851_v16 = vpop.f32.mrf.mxu0  ;;  %v892_v17 = vpop.f32.mrf.mxu1 }
 0x2f8   : > { %1325 = vtanh.f32 %v899_v14  ;;  %v900_v18 = vmul.f32 0.5, %v896_v15 }
 0x2f9   : > { %v852_v19 = vpop.f32.mrf.mxu0  ;;  %v893_v20 = vpop.f32.mrf.mxu1 }
 0x2fa   : > { %1327 = vtanh.f32 %v900_v18 }
 0x2fb   : > { %1329 = vtanh.f32 %v898_v21 }
 0x2fc   : > { %1331 = vtanh.f32 %v901_v23 }
 0x305   : > { %v1326_v25 = vpop.eup %1325 }
 0x306   : > { %v907_v26 = vmul.f32 0.5, %v1326_v25 }
 0x307   : > { %v1328_v27 = vpop.eup %1327 }
 0x308   : > { %v911_v28 = vadd.f32 0.5, %v907_v26  ;;  %v908_v29 = vmul.f32 0.5, %v1328_v27  ;;  %v1330_v31 = vpop.eup %1329 }
 0x309   : > { %v1332_v35 = vpop.eup %1331 }
 0x30a   : > { %v912_v30 = vadd.f32 0.5, %v908_v29  ;;  %v916_v33 = vmul.f32 %v1330_v31, %v911_v28  ;;  %v909_v36 = vmul.f32 0.5, %v1332_v35 }
 0x30c   : > { %v915_v32 = vmul.f32 %v912_v30, %v1768_v56  ;;  %v913_v37 = vadd.f32 0.5, %v909_v36 }
 0x30e   : > { %v917_v34 = vadd.f32 %v916_v33, %v915_v32 }
 0x310   : > { %1333 = vtanh.f32 %v917_v34 }
 0x31d   : > { %v1334_v38 = vpop.eup %1333 }
 0x31e   : > { %v919_v40 = vmul.f32 %v1334_v38, %v913_v37 }
 0x320   : > { %1185 = vst [vmem:[%s1541_s17 + $0x10] sm:$0xff] %v919_v40  ;;  %v929_v50 = vpack.c.bf16 %v919_v40, %v919_v40 }
 0x322   : > { %963 = vmatmul.mubr.bf16.vlgmr.msra.gmra.mxu0 %v929_v50  ;;  %1004 = vmatmul.mubr.bf16.vlgmr.msra.gmra.mxu1 %v929_v50 }
 0x3e2   : > { %v964_v51 = vpop.f32.mrf.mxu0  ;;  %v1005_v52 = vpop.f32.mrf.mxu1 }
 0x3e3   : > { %v1012_v53 = vadd.f32 %v964_v51, %v1719_v55  ;;  %v1014_v63 = vadd.f32 %v1005_v52, %v1880_v62 }
 0x3e4   : > { %v966_v1 = vpop.f32.mrf.mxu0  ;;  %v1007_v54 = vpop.f32.mrf.mxu1 }
 0x3e5   : > { %v1016_v39 = vmul.f32 0.5, %v1012_v53  ;;  %v1013_v41 = vadd.f32 %v966_v1, %v1723_v57  ;;  %v1015_v8 = vadd.f32 %v1007_v54, %v1879_v7  ;;  %v1018_v47 = vmul.f32 0.5, %v1014_v63 }
 0x3e6   : > { %v968_v43 = vpop.f32.mrf.mxu0  ;;  %v1009_v58 = vpop.f32.mrf.mxu1 }
 0x3e7   : > { %1335 = vtanh.f32 %v1016_v39  ;;  %v1017_v45 = vmul.f32 0.5, %v1013_v41 }
 0x3e8   : > { %v969_v59 = vpop.f32.mrf.mxu0  ;;  %v1010_v61 = vpop.f32.mrf.mxu1 }
 0x3e9   : > { %1337 = vtanh.f32 %v1017_v45 }
 0x3ea   : > { %1339 = vtanh.f32 %v1015_v8 }
 0x3eb   : > { %1341 = vtanh.f32 %v1018_v47 }
 0x3f4   : > { %v1336_v55 = vpop.eup %1335 }
 0x3f5   : > { %v1024_v44 = vmul.f32 0.5, %v1336_v55 }
 0x3f6   : > { %v1338_v0 = vpop.eup %1337 }
 0x3f7   : > { %v1028_v49 = vadd.f32 0.5, %v1024_v44  ;;  %v1025_v57 = vmul.f32 0.5, %v1338_v0  ;;  %v1340_v60 = vpop.eup %1339 }
 0x3f8   : > { %v1342_v48 = vpop.eup %1341 }
 0x3f9   : > { %v1029_v42 = vadd.f32 0.5, %v1025_v57  ;;  %v1033_v3 = vmul.f32 %v1340_v60, %v1028_v49  ;;  %v1026_v5 = vmul.f32 0.5, %v1342_v48 }
 0x3fb   : > { %v1032_v2 = vmul.f32 %v1029_v42, %v917_v34  ;;  %v1030_v46 = vadd.f32 0.5, %v1026_v5 }
 0x3fd   : > { %v1034_v56 = vadd.f32 %v1033_v3, %v1032_v2 }
 0x3ff   : > { %1343 = vtanh.f32 %v1034_v56  ;;  %1040 = vst [vmem:[#allocation4] sm:$0xff] %v1034_v56 }
 0x40c   : > { %v1344_v4 = vpop.eup %1343 }
 0x40d   : > { %v1036_v6 = vmul.f32 %v1344_v4, %v1030_v46 }
 0x40f   : > { %1186 = vst [vmem:[%s1541_s17 + $0x18] sm:$0xff] %v1036_v6  ;;  %1039 = vst [vmem:[#allocation3] sm:$0xff] %v1036_v6 }
 0x410   : > { %1384 = shalt.err (!%p1381_p1)
}
 0x411   : > { %s1385_s5 = scalar_lea.hbm %s1819_s8, 512  ;;  %s1389_s24 = scalar_lea.hbm %s1869_s3, 1024 }
 0x412   : > { %p1386_p2 = scmp.ne.s32.totalorder %s1819_s8, %s1385_s5  ;;  %p1390_p7 = scmp.lt.s32.totalorder %s1819_s8, %s1869_s3 }
 0x413   : > { %p1391_p6 = scmp.lt.s32.totalorder %s1389_s24, %s1385_s5 }
 0x414   : > { %p1387_p3 = pnand %p1386_p2, %p1503_p5 }
 0x415   : > { %p1392_p8 = por %p1391_p6, %p1390_p7 }
 0x416   : > { %p1388_p4 = pneg %p1387_p3 }
 0x418   : > { %p1393_p9 = pnand %p1392_p8, %p1388_p4 }
 0x41a   : > { %1396 = shalt.err (!%p1393_p9)
}
 0x41b   : > { %s1443_s27 = smov 128   ;;  %s1444_s28 = smov 8  }
 0x41c   : > { %1197 = dma.vmem_to_hbm [thread:$0]  (%p1503_p5), %s1821_s4, 512, %s1819_s8, %s1826_s9, %s1443_s27, %s1443_s27, %s1444_s28  }
 0x41d PF: > { %p1209_p10 = scmp.ge.s32.totalorder %s1435_s15, 2  ;;  %s1070_s29 = sand.u32 1, %s1423_s12  }
 0x41e   : > { %p1881_p11 = scmp.ne.s32.totalorder %s1873_s23, 0  ;;  %s1071_s30 = scalar_lea.sflag [#allocation7], %s1070_s29 }
 0x420   : > { %p1204_p12 = pnand %p1209_p10, %p1881_p11 }
 0x422   : > { %p1205_p13 = pneg %p1204_p12 }
 0x424   : > { %1418 = dma.done.wait (%p1205_p13), %s1071_s30, 512  }
 0x425   : > { %1420 = vsyncadd (%p1205_p13), %s1071_s30, 4294966784  ;;  %p14_p0 = scmp.ge.s32.totalorder %s1490_s18, 4   ;;  %s1882_s12 = smov %s1427_s13 }
 0x426   : > { %s1883_s13 = smov %s1431_s14  ;;  %s1884_s14 = smov %s1501_s21 }
 0x427   : > { %s1885_s15 = smov %s1490_s18  ;;  %16 = sbr.rel (!%p14_p0) target bundleno = 4 (0x4), region = 83 }
 0x42c   :  { %1076 = vsyncpa [#allocation6], 1 }
 0x42d   :  { %1078 = vsyncpa [#allocation6 + $0x1], 1 }
 0x42e   :  { %1079 = vsyncpa [#allocation7], 1 }
 0x42f   :  { %1081 = vsyncpa [#allocation7 + $0x1], 1 }

</bundles_post_ra>
